<compile_context>
chip_gen: v7x
topology: tpu7x:2x2x1
jax: 0.10.0
libtpu: 0.0.40
codegen_flags: <defaults>
</compile_context>

<pallas_src>
import jax
import jax.numpy as jnp
from jax.experimental import pallas as pl
from jax.experimental.pallas import tpu as pltpu


def _round_up(x: int, m: int) -> int:
    return ((x + m - 1) // m) * m


def _patch_embed_kernel(x_ref, w_ref, b_ref, o_ref):
    # x_ref: (tm, K) bf16, w_ref: (K, Ep) bf16, b_ref: (1, Ep) f32, o_ref: (tm, Ep) f32
    acc = jnp.dot(x_ref[...], w_ref[...], preferred_element_type=jnp.float32)
    o_ref[...] = (acc + b_ref[...]).astype(o_ref.dtype)


def patch_linear_proj(x_patches, weight_t, bias2d, *, block_m=256,
                      out_dtype=jnp.float32):
    """x_patches: (M, K), weight_t: (K, Ep) [Ep % 128 == 0], bias2d: (1, Ep) f32.
    Returns (M, Ep) in out_dtype."""
    M, K = x_patches.shape
    Kw, Ep = weight_t.shape
    assert K == Kw and Ep % 128 == 0

    # M tiling: multiple of 16 (bf16 sublane packing); pad the remainder so no
    # rows are silently dropped, slice the pad rows off afterwards.
    tm = min(block_m, _round_up(M, 16))
    m_pad = _round_up(M, tm)
    if m_pad != M:
        x_patches = jnp.pad(x_patches, ((0, m_pad - M), (0, 0)))
    grid = (m_pad // tm,)

    x_bytes = jnp.dtype(x_patches.dtype).itemsize
    w_bytes = jnp.dtype(weight_t.dtype).itemsize
    o_bytes = jnp.dtype(out_dtype).itemsize

    # Double-buffered x/out tiles + (grid-invariant, still double-buffered) W + bias.
    vmem_needed = (2 * tm * K * x_bytes + 2 * K * Ep * w_bytes
                   + 2 * Ep * 4 + 2 * tm * Ep * o_bytes)
    vmem_limit = int(max(vmem_needed + (4 << 20), 32 << 20))  # stays << 64 MiB here

    cost = pl.CostEstimate(
        flops=2 * m_pad * K * Ep,
        transcendentals=0,
        bytes_accessed=(m_pad * K * x_bytes + K * Ep * w_bytes
                        + Ep * 4 + m_pad * Ep * o_bytes),
    )

    out = pl.pallas_call(
        _patch_embed_kernel,
        out_shape=jax.ShapeDtypeStruct((m_pad, Ep), out_dtype),
        grid_spec=pltpu.PrefetchScalarGridSpec(
            num_scalar_prefetch=0,
            grid=grid,
            in_specs=[
                pl.BlockSpec((tm, K), lambda i: (i, 0)),   # x tile, pipelined over M
                pl.BlockSpec((K, Ep), lambda i: (0, 0)),   # whole weight (grid-invariant)
                pl.BlockSpec((1, Ep), lambda i: (0, 0)),   # bias
            ],
            out_specs=pl.BlockSpec((tm, Ep), lambda i: (i, 0)),
        ),
        compiler_params=pltpu.CompilerParams(
            dimension_semantics=("parallel",),   # M shards across TCs on v7x megacore
            vmem_limit_bytes=vmem_limit,
        ),
        cost_estimate=cost,
    )(x_patches, weight_t, bias2d)
    return out[:M] if m_pad != M else out


def extract_patches(x, patch_size):
    """Replicates torch unfold/unfold/reshape/movedim/flatten.

    x: (B, C, H, W) -> (B, num_patches, patch_size*patch_size*C)
    with feature order [row_in_patch, col_in_patch, channel].
    """
    B, C, H, W = x.shape
    P = patch_size
    Hp, Wp = H // P, W // P
    x = x.reshape(B, C, Hp, P, Wp, P)
    x = jnp.transpose(x, (0, 2, 4, 3, 5, 1))      # (B, Hp, Wp, Prow, Pcol, C)
    return x.reshape(B, Hp * Wp, P * P * C)


def prepare_patch_embedding_params(weight, bias, *, compute_dtype=jnp.bfloat16):
    """One-time parameter prep (call outside the per-step hot path).

    weight: (E, K) torch nn.Linear layout, bias: (E,).
    Returns (w_t: (K, Ep) compute_dtype, bias2d: (1, Ep) f32, E) with Ep a
    multiple of 128 for lane-dense MXU / output tiles."""
    E, K = weight.shape
    e_pad = _round_up(E, 128)
    w_t = jnp.pad(jnp.transpose(weight), ((0, 0), (0, e_pad - E))).astype(compute_dtype)
    bias2d = jnp.pad(bias.astype(jnp.float32), (0, e_pad - E)).reshape(1, e_pad)
    return w_t, bias2d, E


def patch_embedding_forward(x, w_t, bias2d, embedding_size, patch_size, *,
                            block_m=256, compute_dtype=jnp.bfloat16,
                            force_pallas=False):
    """x: (B, C, H, W); w_t/bias2d from prepare_patch_embedding_params.
    Returns (B, num_patches, embedding_size) float32."""
    B, C, H, W = x.shape
    K = patch_size * patch_size * C
    # Cast before the patch transpose so the layout pass moves half the bytes.
    patches = extract_patches(x.astype(compute_dtype), patch_size)   # (B, NP, K)
    NP = patches.shape[1]
    flat = patches.reshape(B * NP, K)

    ep = w_t.shape[1]
    # Tiny problems: per-call Pallas overhead dominates -> plain XLA dot.
    if (not force_pallas) and (2 * B * NP * K * ep) < (1 << 24):
        out_p = jnp.dot(flat, w_t, preferred_element_type=jnp.float32) + bias2d
    else:
        out_p = patch_linear_proj(flat, w_t, bias2d, block_m=block_m,
                                  out_dtype=jnp.float32)
    return out_p[:, :embedding_size].reshape(B, NP, embedding_size)


if __name__ == "__main__":
    # Small shapes consistent with the module:
    #   img_size=16, input_channels=4, patch_size=8, embedding_size=32
    batch, channels, img_size = 2, 4, 16
    patch_size, embedding_size = 8, 32
    K = patch_size * patch_size * channels  # 256
    num_patches = (img_size // patch_size) ** 2  # 4

    key = jax.random.PRNGKey(0)
    kx, kw, kb = jax.random.split(key, 3)

    x = jax.random.normal(kx, (batch, channels, img_size, img_size), dtype=jnp.float32)
    # Deterministic synthetic nn.Linear params (torch layout: weight (E, K), bias (E,))
    bound = 1.0 / (K ** 0.5)
    weight = jax.random.uniform(kw, (embedding_size, K), minval=-bound, maxval=bound,
                                dtype=jnp.float32)
    bias = jax.random.uniform(kb, (embedding_size,), minval=-bound, maxval=bound,
                              dtype=jnp.float32)

    # One-time param prep (transpose + pad-E-to-128 + bf16 cast).
    w_t, bias2d, e_out = prepare_patch_embedding_params(weight, bias)

    # Force the Pallas path even at toy size so the kernel is exercised.
    out = patch_embedding_forward(x, w_t, bias2d, e_out, patch_size,
                                  force_pallas=True)
    out = jax.block_until_ready(out)
    assert out.shape == (batch, num_patches, embedding_size)

    # Reference 1: identical math (bf16 operands, f32 accumulate + f32 bias) in pure JAX.
    flat_ref = extract_patches(x.astype(jnp.bfloat16), patch_size).reshape(
        batch * num_patches, K)
    ref = (jnp.dot(flat_ref, w_t, preferred_element_type=jnp.float32) + bias2d)
    ref = ref[:, :e_out].reshape(batch, num_patches, e_out)
    assert jnp.allclose(out, ref, atol=1e-3, rtol=1e-3)

    # Reference 2: the original full-f32 module semantics (loose tolerance for bf16).
    ref_f32 = extract_patches(x, patch_size) @ weight.T + bias
    assert jnp.allclose(out, ref_f32, atol=1e-1, rtol=5e-2)

    print("KERNEL_OK")
</pallas_src>

<mosaic_0001>
module attributes {stable_mosaic.version = 11 : i64} {
  func.func @_patch_embed_kernel(%arg0: i32, %arg1: memref<16x256xbf16, #tpu.memory_space<vmem>>, %arg2: memref<256x128xbf16, #tpu.memory_space<vmem>>, %arg3: memref<1x128xf32, #tpu.memory_space<vmem>>, %arg4: memref<16x128xf32, #tpu.memory_space<vmem>>) attributes {dimension_semantics = [#tpu.dimension_semantics<parallel>], iteration_bounds = array<i64: 1>, scalar_prefetch = 0 : i64, scratch_operands = 0 : i64, tpu.core_type = #tpu.core_type<tc>, window_params = [{transform_indices = @transform_0, window_bounds = array<i64: 16, 256>}, {pipeline_mode = #tpu.pipeline_mode<synchronous>, transform_indices = @transform_1, window_bounds = array<i64: 256, 128>}, {pipeline_mode = #tpu.pipeline_mode<synchronous>, transform_indices = @transform_2, window_bounds = array<i64: 1, 128>}, {transform_indices = @transform_3, window_bounds = array<i64: 16, 128>}]} {
    %c0 = arith.constant 0 : index
    %c0_0 = arith.constant 0 : index
    %0 = vector.load %arg1[%c0, %c0_0] : memref<16x256xbf16, #tpu.memory_space<vmem>>, vector<16x256xbf16>
    %c0_1 = arith.constant 0 : index
    %c0_2 = arith.constant 0 : index
    %1 = vector.load %arg2[%c0_1, %c0_2] : memref<256x128xbf16, #tpu.memory_space<vmem>>, vector<256x128xbf16>
    %cst = arith.constant dense<0.000000e+00> : vector<16x128xf32>
    %2 = tpu.matmul %0, %1, %cst {dimension_numbers = #tpu.dot_dimension_numbers<[1], [0], [0], [1], [0, 0, 1, 1], [], []>} : vector<16x256xbf16>, vector<256x128xbf16>, vector<16x128xf32> -> vector<16x128xf32>
    %c0_3 = arith.constant 0 : index
    %c0_4 = arith.constant 0 : index
    %3 = vector.load %arg3[%c0_3, %c0_4] : memref<1x128xf32, #tpu.memory_space<vmem>>, vector<1x128xf32>
    %4 = vector.broadcast %3 : vector<1x128xf32> to vector<16x128xf32>
    %5 = arith.addf %2, %4 : vector<16x128xf32>
    %c0_5 = arith.constant 0 : index
    %c0_6 = arith.constant 0 : index
    %6 = vector.load %arg4[%c0_5, %c0_6] : memref<16x128xf32, #tpu.memory_space<vmem>>, vector<16x128xf32>
    tpu.vector_store %arg4[%c0_5, %c0_6], %5 {strides = array<i32>} : memref<16x128xf32, #tpu.memory_space<vmem>>, vector<16x128xf32>,
    return
  }
  func.func @transform_0(%arg0: i32) -> (i32, i32) {
    %c0_i32 = arith.constant 0 : i32
    %c0_i32_0 = arith.constant 0 : i32
    return %arg0, %c0_i32 : i32, i32
  }
  func.func @transform_1(%arg0: i32) -> (i32, i32) {
    %c0_i32 = arith.constant 0 : i32
    %c0_i32_0 = arith.constant 0 : i32
    %c0_i32_1 = arith.constant 0 : i32
    return %c0_i32, %c0_i32_0 : i32, i32
  }
  func.func @transform_2(%arg0: i32) -> (i32, i32) {
    %c0_i32 = arith.constant 0 : i32
    %c0_i32_0 = arith.constant 0 : i32
    %c0_i32_1 = arith.constant 0 : i32
    return %c0_i32, %c0_i32_0 : i32, i32
  }
  func.func @transform_3(%arg0: i32) -> (i32, i32) {
    %c0_i32 = arith.constant 0 : i32
    %c0_i32_0 = arith.constant 0 : i32
    return %arg0, %c0_i32 : i32, i32
  }
}

</mosaic_0001>

<bundles_post_ra>
// kernel: tpu_custom_call.1
= control target key start
LH: loop header
LB: loop body
LE: loop exit
PB: predicated region body
PF: predicated region fallthrough
CT: control target
= control target key end

     0   :  { %8 = vsyncpa [#allocation3], 0  ;;  %s463_s0 = inlined_call_operand.hbm [shape: bf16[16,256], index: 0, kind: input, shape index: {}]   ;;  %s464_s1 = inlined_call_operand.hbm [shape: bf16[256,128], index: 1, kind: input, shape index: {}]   ;;  %s465_s2 = inlined_call_operand.vmem [shape: f32[1,128], index: 2, kind: input, shape index: {}]   ;;  %s466_s3 = inlined_call_operand.hbm [shape: f32[16,128], index: 3, kind: output, shape index: {}]  }
   0x1   :  { %9 = vsyncpa [#allocation6], 0 }
   0x2   :  { %10 = vsyncpa [#allocation4], 0  ;;  %s391_s12 = smov [#allocation2]   ;;  %s319_s16 = scalar_lea.hbm %s463_s0, 256 }
   0x3   :  { %s16_s13 = sshll.u32 %s391_s12, 4  ;;  %p320_p0 = scmp.ne.s32.totalorder %s463_s0, %s319_s16  ;;  %s17_s13 = int_to_ptr.vmem [resolvable:$true] %s16_s13 }
   0x4   :  { %p323_p1 = scmp.lt.u32.totalorder %s319_s16, %s463_s0 }
   0x6   :  { %p325_p2 = pnand %p323_p1, %p320_p0 }
   0x8   :  { %328 = shalt.err (!%p325_p2)
}
   0x9   :  { %s329_s21 = scalar_lea.vmem %s17_s13, 256  ;;  %p334_p4 = scmp.lt.s32.totalorder %s17_s13, %s17_s13 }
   0xa   :  { %p330_p3 = scmp.ne.s32.totalorder %s17_s13, %s329_s21  ;;  %p335_p5 = scmp.lt.s32.totalorder %s329_s21, %s329_s21 }
   0xc   :  { %p336_p6 = por %p335_p5, %p334_p4 }
   0xe   :  { %p337_p7 = pnand %p336_p6, %p330_p3 }
  0x10   :  { %340 = shalt.err (!%p337_p7)
}
  0x11   :  { %s392_s22 = smov 128   ;;  %s393_s23 = smov 8  }
  0x12   :  { %22 = dma.hbm_to_vmem [thread:$0]  %s463_s0, 256, %s17_s13, [#allocation3], %s392_s22, %s392_s22, %s393_s23  }
  0x13   :  { %s394_s26 = smov [#allocation5]   ;;  %s341_s30 = scalar_lea.hbm %s464_s1, 2048 }
  0x14   :  { %s28_s27 = sshll.u32 %s394_s26, 4  ;;  %p342_p8 = scmp.ne.s32.totalorder %s464_s1, %s341_s30  ;;  %s29_s27 = int_to_ptr.vmem [resolvable:$true] %s28_s27 }
  0x15   :  { %p345_p9 = scmp.lt.u32.totalorder %s341_s30, %s464_s1 }
  0x17   :  { %p347_p10 = pnand %p345_p9, %p342_p8 }
  0x19   :  { %350 = shalt.err (!%p347_p10)
}
  0x1a   :  { %s351_s8 = scalar_lea.vmem %s29_s27, 2048  ;;  %p356_p12 = scmp.lt.s32.totalorder %s29_s27, %s29_s27 }
  0x1b   :  { %p352_p11 = scmp.ne.s32.totalorder %s29_s27, %s351_s8  ;;  %p357_p13 = scmp.lt.s32.totalorder %s351_s8, %s351_s8 }
  0x1d   :  { %p358_p0 = por %p357_p13, %p356_p12 }
  0x1f   :  { %p359_p1 = pnand %p358_p0, %p352_p11 }
  0x21   :  { %362 = shalt.err (!%p359_p1)
}
  0x22   :  { %s395_s0 = smov 64   ;;  %s396_s9 = smov 4  }
  0x23   :  { %34 = dma.hbm_to_vmem [thread:$0]  %s464_s1, 2048, %s29_s27, [#allocation6], %s395_s0, %s395_s0, %s396_s9  }
  0x24   :  { %385 = dma.done.wait [#allocation3], 256  }
  0x25   :  { %386 = vsyncadd [#allocation3], 4294967040 }
  0x26   :  { %387 = dma.done.wait [#allocation6], 2048  }
  0x27   :  { %388 = vsyncadd [#allocation6], 4294965248  ;;  %v300_v0 = vld [vmem:[#allocation5 + $0x40] sm:$0xff]   ;;  %v302_v2 = vld [vmem:[#allocation5 + $0x48] sm:$0xff]   ;;  %s397_s13 = smov [#allocation7]  }
  0x28   :  { %v301_v1 = vld [vmem:[#allocation5] sm:$0xff]   ;;  %271 = vmatprep.subr.bf16.mxu0 %v300_v0  ;;  %v303_v3 = vld [vmem:[#allocation5 + $0x8] sm:$0xff]   ;;  %v304_v4 = vld [vmem:[#allocation5 + $0x50] sm:$0xff]   ;;  %s239_s14 = sshll.u32 %s397_s13, 4  ;;  %s240_s14 = int_to_ptr.vmem [resolvable:$true] %s239_s14 }
  0x29   :  { %272 = vmatpush3.bf16.msra.mxu0 %v301_v1  ;;  %v305_v5 = vld [vmem:[#allocation5 + $0x10] sm:$0xff]   ;;  %v306_v6 = vld [vmem:[#allocation5 + $0x58] sm:$0xff]   ;;  %v308_v8 = vld [vmem:[#allocation5 + $0x60] sm:$0xff]   ;;  %s363_s15 = scalar_lea.vmem %s240_s14, 256  ;;  %p368_p3 = scmp.lt.s32.totalorder %s240_s14, %s240_s14 }
  0x2a   :  { %273 = vmatprep.subr.bf16.mxu0 %v302_v2  ;;  %v307_v7 = vld [vmem:[#allocation5 + $0x18] sm:$0xff]   ;;  %v309_v9 = vld [vmem:[#allocation5 + $0x20] sm:$0xff]   ;;  %v310_v10 = vld [vmem:[#allocation5 + $0x68] sm:$0xff]   ;;  %p364_p2 = scmp.ne.s32.totalorder %s240_s14, %s363_s15  ;;  %p369_p4 = scmp.lt.s32.totalorder %s363_s15, %s363_s15 }
  0x2b   :  { %v318_v11 = vld [vmem:[#allocation2 + $0x4] ss:$8 sps:$4 sm:$0xff]   ;;  %v311_v12 = vld [vmem:[#allocation5 + $0x28] sm:$0xff]   ;;  %v316_v17 = vld [vmem:[#allocation2] ss:$8 sps:$4 sm:$0xff]  }
  0x2c   :  { %223 = vmatprep.mubr.bf16.mxu0 %v318_v11  ;;  %v312_v13 = vld [vmem:[#allocation5 + $0x70] sm:$0xff]   ;;  %v314_v15 = vld [vmem:[#allocation5 + $0x78] sm:$0xff]   ;;  %p370_p5 = por %p369_p4, %p368_p3 }
  0x2d   :  { %274 = vmatpush3.bf16.msra.mxu0 %v303_v3  ;;  %v313_v14 = vld [vmem:[#allocation5 + $0x30] sm:$0xff]   ;;  %v315_v16 = vld [vmem:[#allocation5 + $0x38] sm:$0xff]  }
  0x2e   :  { %275 = vmatprep.subr.bf16.mxu0 %v304_v4  ;;  %v252_v19 = vld [vmem:[%s465_s2] ss:$0 sm:$0xff]  ;;  %p371_p6 = pnand %p370_p5, %p364_p2 }
  0x31   :  { %276 = vmatpush3.bf16.msra.mxu0 %v305_v5 }
  0x32   :  { %277 = vmatprep.subr.bf16.mxu0 %v306_v6 }
  0x35   :  { %278 = vmatpush3.bf16.msra.mxu0 %v307_v7 }
  0x36   :  { %279 = vmatprep.subr.bf16.mxu0 %v308_v8 }
  0x39   :  { %280 = vmatpush3.bf16.msra.mxu0 %v309_v9 }
  0x3a   :  { %281 = vmatprep.subr.bf16.mxu0 %v310_v10 }
  0x3d   :  { %282 = vmatpush3.bf16.msra.mxu0 %v311_v12 }
  0x3e   :  { %283 = vmatprep.subr.bf16.mxu0 %v312_v13 }
  0x41   :  { %284 = vmatpush3.bf16.msra.mxu0 %v313_v14 }
  0x42   :  { %285 = vmatprep.subr.bf16.mxu0 %v314_v15 }
  0x45   :  { %286 = vmatpush3.bf16.msra.mxu0 %v315_v16 }
  0x48   :  { %224 = vmatmul.mubr.bf16.vlgmr.msra.gmra.mrb[0].mxu0 %v316_v17 }
 0x11b   :  { %v287_v18 = vpop.f32.mrb[0].mxu0 }
 0x11c   :  { %v288_v20 = vpop.f32.mrb[1].mxu0 }
 0x11d   :  { %v289_v21 = vadd.f32 %v288_v20, %v287_v18  ;;  %v290_v22 = vpop.f32.mrb[2].mxu0 }
 0x11e   :  { %v291_v23 = vpop.f32.mrb[3].mxu0 }
 0x11f   :  { %v226_v24 = vadd.f32 %v289_v21, %v252_v19  ;;  %v292_v25 = vadd.f32 %v291_v23, %v290_v22 }
 0x121   :  { %232 = vst [vmem:[#allocation7] sm:$0xff] %v226_v24  ;;  %v229_v26 = vadd.f32 %v292_v25, %v252_v19 }
 0x123   :  { %233 = vst [vmem:[#allocation7 + $0x8] sm:$0xff] %v229_v26 }
 0x124   :  { %374 = shalt.err (!%p371_p6)
}
 0x125   :  { %s375_s17 = scalar_lea.hbm %s466_s3, 256 }
 0x126   :  { %p376_p7 = scmp.ne.s32.totalorder %s466_s3, %s375_s17  ;;  %p379_p8 = scmp.lt.u32.totalorder %s375_s17, %s466_s3 }
 0x128   :  { %p381_p9 = pnand %p379_p8, %p376_p7 }
 0x12a   :  { %384 = shalt.err (!%p381_p9)
}
 0x12b   :  { %245 = dma.vmem_to_hbm [thread:$0]  %s240_s14, 256, %s466_s3, [#allocation4], %s392_s22, %s392_s22, %s393_s23  }
 0x12c   :  { %389 = dma.done.wait [#allocation4], 256  }
 0x12d   :  { %390 = vsyncadd [#allocation4], 4294967040 }
 0x12e   :  { %249 = vsyncpa [#allocation3], 1 }
 0x12f   :  { %250 = vsyncpa [#allocation6], 1 }
 0x130   :  { %251 = vsyncpa [#allocation4], 1 }

</bundles_post_ra>
